<compile_context>
chip_gen: v5e
topology: v5e:2x2
jax: 0.10.0
libtpu: 0.0.40
codegen_flags: <defaults>
</compile_context>

<pallas_src>
import jax
import jax.numpy as jnp
from jax.experimental import pallas as pl
from jax.experimental.pallas import tpu as pltpu


def _linear2_kernel(x_ref, w1t_ref, t1_ref, w2t_ref, t2_ref, o_ref):
    # x_ref  : (1, C, TM)  channels on sublanes, pixels on lanes
    # w1t_ref: (Ch, C)     BN1 scale folded in
    # t1_ref : (Ch, 1)     folded BN1 shift (+ conv1 bias)
    # w2t_ref: (C, Ch)     BN2 scale folded in
    # t2_ref : (C, 1)      folded BN2 shift (+ conv2 bias)
    x = x_ref[0].astype(jnp.float32)                              # (C, TM)

    # Conv1x1 (C -> C/2) + BN1 + ReLU
    h = jnp.dot(w1t_ref[...].astype(jnp.float32), x,
                preferred_element_type=jnp.float32)               # (Ch, TM)
    h = jnp.maximum(h + t1_ref[...], 0.0)

    # Conv1x1 (C/2 -> C) + BN2
    y = jnp.dot(w2t_ref[...].astype(jnp.float32), h,
                preferred_element_type=jnp.float32)               # (C, TM)
    y = y + t2_ref[...]

    # Residual + ReLU; lane-dense store (pixel tile is a multiple of 128).
    o_ref[0] = jnp.maximum(y + x, 0.0).astype(o_ref.dtype)


def _pick_pixel_tile(n_pixels, max_tile):
    """Largest multiple of 128 that divides n_pixels and is <= max_tile.
    Falls back to the full extent (always a legal block) otherwise."""
    if n_pixels <= 128 or n_pixels % 128 != 0:
        return n_pixels
    best = 128
    t = 256
    limit = min(max_tile, n_pixels)
    while t <= limit:
        if n_pixels % t == 0:
            best = t
        t += 128
    return best


def linear2layer_pallas(x_nchw, params, *, tile_m=2048,
                        vmem_budget_bytes=36 * 1024 * 1024):
    """x_nchw: (B, C, H, W). params: dict from make_params (eval-mode BN)."""
    B, C, H, W = x_nchw.shape
    Ch = C // 2
    HW = H * W

    # NCHW -> (B, C, H*W): contiguous reshape, no transpose, no extra HBM pass.
    x3d = x_nchw.reshape(B, C, HW)

    # Fold BN scales into the transposed (out, in) weights once; these are
    # constants, folded by XLA outside the hot path.
    w1t = (params["w1"] * params["s1"]).T                         # (Ch, C)
    w2t = (params["w2"] * params["s2"]).T                         # (C, Ch)
    t1c = params["t1"].reshape(Ch, 1)
    t2c = params["t2"].reshape(C, 1)

    # Pick the largest pixel tile that (a) is a multiple of 128 lanes,
    # (b) divides H*W, and (c) keeps the double-buffered input + output tiles
    # inside a VMEM budget that is safe on v7x (64 MiB physical VMEM).
    itemsize = x3d.dtype.itemsize
    bytes_per_pixel = 2 * 2 * C * itemsize        # 2x-buffered input + output
    tm_cap = max(128, (vmem_budget_bytes // max(bytes_per_pixel, 1)) // 128 * 128)
    tm = _pick_pixel_tile(HW, min(tile_m, tm_cap))
    grid = (B, HW // tm)

    n_pix = B * HW
    cost = pl.CostEstimate(
        flops=4 * n_pix * C * Ch,                 # two C<->C/2 matmuls / pixel
        transcendentals=0,
        bytes_accessed=2 * x3d.size * itemsize + (w1t.size + w2t.size) * 4,
    )

    out3d = pl.pallas_call(
        _linear2_kernel,
        out_shape=jax.ShapeDtypeStruct((B, C, HW), x3d.dtype),
        grid_spec=pltpu.PrefetchScalarGridSpec(
            num_scalar_prefetch=0,
            grid=grid,
            in_specs=[
                pl.BlockSpec((1, C, tm), lambda b, j: (b, 0, j)),   # x slab
                # Constant-index weights/biases: DMA'd once, stay resident.
                pl.BlockSpec((Ch, C), lambda b, j: (0, 0)),         # w1t
                pl.BlockSpec((Ch, 1), lambda b, j: (0, 0)),         # t1
                pl.BlockSpec((C, Ch), lambda b, j: (0, 0)),         # w2t
                pl.BlockSpec((C, 1), lambda b, j: (0, 0)),          # t2
            ],
            out_specs=pl.BlockSpec((1, C, tm), lambda b, j: (b, 0, j)),
        ),
        compiler_params=pltpu.CompilerParams(
            dimension_semantics=("parallel", "parallel"),
            vmem_limit_bytes=48 * 1024 * 1024,    # above the 16/32 MiB scoped defaults
        ),
        cost_estimate=cost,
    )(x3d, w1t, t1c, w2t, t2c)

    # (B, C, H*W) -> (B, C, H, W): free contiguous reshape.
    return out3d.reshape(B, C, H, W)


def make_params(in_channels, eps=1e-5):
    """Deterministic synthetic parameters; BN in eval mode (running stats)."""
    C = in_channels
    Ch = C // 2

    def ramp(n, lo, hi):
        return jnp.linspace(lo, hi, n, dtype=jnp.float32)

    # Conv weights stored in per-pixel matmul form (in, out); bounded ramps so
    # magnitudes stay O(1) for any channel count.
    w1 = ramp(C * Ch, -0.5, 0.5).reshape(C, Ch)
    b1 = ramp(Ch, -0.10, 0.10)
    w2 = ramp(Ch * C, -0.40, 0.40).reshape(Ch, C)
    b2 = ramp(C, -0.05, 0.05)

    # BatchNorm params (eval mode: running mean/var + affine gamma/beta).
    g1 = 1.0 + ramp(Ch, -0.20, 0.20)
    be1 = ramp(Ch, -0.05, 0.05)
    rm1 = ramp(Ch, -0.10, 0.10)
    rv1 = 1.0 + ramp(Ch, 0.0, 0.30)
    g2 = 1.0 + ramp(C, -0.10, 0.10)
    be2 = ramp(C, -0.02, 0.02)
    rm2 = ramp(C, -0.05, 0.05)
    rv2 = 1.0 + ramp(C, 0.0, 0.20)

    # Fold BN + conv bias:  BN(x@w + b) = (x@w) * s + t
    s1 = g1 / jnp.sqrt(rv1 + eps)
    t1 = be1 + s1 * (b1 - rm1)
    s2 = g2 / jnp.sqrt(rv2 + eps)
    t2 = be2 + s2 * (b2 - rm2)

    return {
        "w1": w1, "s1": s1.reshape(1, Ch), "t1": t1.reshape(1, Ch),
        "w2": w2, "s2": s2.reshape(1, C), "t2": t2.reshape(1, C),
    }


def linear2layer_ref(x_nchw, params):
    """Pure-JAX reference (same folded-BN, eval-mode semantics)."""
    B, C, H, W = x_nchw.shape
    x2d = jnp.transpose(x_nchw, (0, 2, 3, 1)).reshape(-1, C)
    h = jnp.maximum(x2d @ params["w1"] * params["s1"] + params["t1"], 0.0)
    y = h @ params["w2"] * params["s2"] + params["t2"]
    o = jnp.maximum(y + x2d, 0.0)
    return jnp.transpose(o.reshape(B, H, W, C), (0, 3, 1, 2))


if __name__ == "__main__":
    key = jax.random.PRNGKey(0)
    k_small, k_big = jax.random.split(key)

    # Small shape from the module spec (B=2, C=4, 16x16 spatial).
    B, C, H, W = 2, 4, 16, 16
    x = jax.random.normal(k_small, (B, C, H, W), dtype=jnp.float32)
    params = make_params(C)
    out = jax.block_until_ready(linear2layer_pallas(x, params))
    ref = linear2layer_ref(x, params)
    assert out.shape == (B, C, H, W)
    assert jnp.allclose(out, ref, atol=1e-5, rtol=1e-4), "mismatch vs reference (C=4)"

    # Realistic channel count to exercise the lane-dense (C, pixels) layout.
    B2, C2, H2, W2 = 2, 128, 16, 16
    x2 = jax.random.normal(k_big, (B2, C2, H2, W2), dtype=jnp.float32)
    params2 = make_params(C2)
    out2 = jax.block_until_ready(linear2layer_pallas(x2, params2))
    ref2 = linear2layer_ref(x2, params2)
    assert out2.shape == (B2, C2, H2, W2)
    assert jnp.allclose(out2, ref2, atol=1e-4, rtol=1e-4), "mismatch vs reference (C=128)"

    print("KERNEL_OK")
</pallas_src>

<mosaic_0001>
module attributes {stable_mosaic.version = 11 : i64} {
  func.func @_linear2_kernel(%arg0: i32, %arg1: i32, %arg2: memref<1x4x256xf32, #tpu.memory_space<vmem>>, %arg3: memref<2x4xf32, #tpu.memory_space<vmem>>, %arg4: memref<2x1xf32, #tpu.memory_space<vmem>>, %arg5: memref<4x2xf32, #tpu.memory_space<vmem>>, %arg6: memref<4x1xf32, #tpu.memory_space<vmem>>, %arg7: memref<1x4x256xf32, #tpu.memory_space<vmem>>) attributes {dimension_semantics = [#tpu.dimension_semantics<parallel>, #tpu.dimension_semantics<parallel>], iteration_bounds = array<i64: 2, 1>, scalar_prefetch = 0 : i64, scratch_operands = 0 : i64, tpu.core_type = #tpu.core_type<tc>, window_params = [{transform_indices = @transform_0, window_bounds = array<i64: 1, 4, 256>}, {pipeline_mode = #tpu.pipeline_mode<synchronous>, transform_indices = @transform_1, window_bounds = array<i64: 2, 4>}, {pipeline_mode = #tpu.pipeline_mode<synchronous>, transform_indices = @transform_2, window_bounds = array<i64: 2, 1>}, {pipeline_mode = #tpu.pipeline_mode<synchronous>, transform_indices = @transform_3, window_bounds = array<i64: 4, 2>}, {pipeline_mode = #tpu.pipeline_mode<synchronous>, transform_indices = @transform_4, window_bounds = array<i64: 4, 1>}, {transform_indices = @transform_5, window_bounds = array<i64: 1, 4, 256>}]} {
    %c0 = arith.constant 0 : index
    %c0_0 = arith.constant 0 : index
    %c0_1 = arith.constant 0 : index
    %0 = vector.load %arg2[%c0, %c0_0, %c0_1] : memref<1x4x256xf32, #tpu.memory_space<vmem>>, vector<1x4x256xf32>
    %1 = vector.shape_cast %0 : vector<1x4x256xf32> to vector<4x256xf32>
    %c0_2 = arith.constant 0 : index
    %c0_3 = arith.constant 0 : index
    %2 = vector.load %arg3[%c0_2, %c0_3] : memref<2x4xf32, #tpu.memory_space<vmem>>, vector<2x4xf32>
    %cst = arith.constant dense<0.000000e+00> : vector<2x256xf32>
    %3 = tpu.matmul %2, %1, %cst {dimension_numbers = #tpu.dot_dimension_numbers<[1], [0], [0], [1], [0, 0, 1, 1], [], []>} : vector<2x4xf32>, vector<4x256xf32>, vector<2x256xf32> -> vector<2x256xf32>
    %c0_4 = arith.constant 0 : index
    %c0_5 = arith.constant 0 : index
    %4 = vector.load %arg4[%c0_4, %c0_5] : memref<2x1xf32, #tpu.memory_space<vmem>>, vector<2x1xf32>
    %5 = vector.broadcast %4 : vector<2x1xf32> to vector<2x256xf32>
    %6 = arith.addf %3, %5 : vector<2x256xf32>
    %cst_6 = arith.constant 0.000000e+00 : f32
    %7 = vector.broadcast %cst_6 : f32 to vector<2x256xf32>
    %8 = arith.maximumf %6, %7 : vector<2x256xf32>
    %c0_7 = arith.constant 0 : index
    %c0_8 = arith.constant 0 : index
    %9 = vector.load %arg5[%c0_7, %c0_8] : memref<4x2xf32, #tpu.memory_space<vmem>>, vector<4x2xf32>
    %cst_9 = arith.constant dense<0.000000e+00> : vector<4x256xf32>
    %10 = tpu.matmul %9, %8, %cst_9 {dimension_numbers = #tpu.dot_dimension_numbers<[1], [0], [0], [1], [0, 0, 1, 1], [], []>} : vector<4x2xf32>, vector<2x256xf32>, vector<4x256xf32> -> vector<4x256xf32>
    %c0_10 = arith.constant 0 : index
    %c0_11 = arith.constant 0 : index
    %11 = vector.load %arg6[%c0_10, %c0_11] : memref<4x1xf32, #tpu.memory_space<vmem>>, vector<4x1xf32>
    %12 = vector.broadcast %11 : vector<4x1xf32> to vector<4x256xf32>
    %13 = arith.addf %10, %12 : vector<4x256xf32>
    %14 = arith.addf %13, %1 : vector<4x256xf32>
    %cst_12 = arith.constant 0.000000e+00 : f32
    %15 = vector.broadcast %cst_12 : f32 to vector<4x256xf32>
    %16 = arith.maximumf %14, %15 : vector<4x256xf32>
    %c0_13 = arith.constant 0 : index
    %c0_14 = arith.constant 0 : index
    %c0_15 = arith.constant 0 : index
    %17 = vector.load %arg7[%c0_13, %c0_14, %c0_15] : memref<1x4x256xf32, #tpu.memory_space<vmem>>, vector<1x4x256xf32>
    %18 = vector.shape_cast %17 : vector<1x4x256xf32> to vector<4x256xf32>
    %19 = vector.shape_cast %16 : vector<4x256xf32> to vector<1x4x256xf32>
    tpu.vector_store %arg7[%c0_13, %c0_14, %c0_15], %19 {strides = array<i32>} : memref<1x4x256xf32, #tpu.memory_space<vmem>>, vector<1x4x256xf32>,
    return
  }
  func.func @transform_0(%arg0: i32, %arg1: i32) -> (i32, i32, i32) {
    %c0_i32 = arith.constant 0 : i32
    %c0_i32_0 = arith.constant 0 : i32
    return %arg0, %c0_i32, %arg1 : i32, i32, i32
  }
  func.func @transform_1(%arg0: i32, %arg1: i32) -> (i32, i32) {
    %c0_i32 = arith.constant 0 : i32
    %c0_i32_0 = arith.constant 0 : i32
    %c0_i32_1 = arith.constant 0 : i32
    return %c0_i32, %c0_i32_0 : i32, i32
  }
  func.func @transform_2(%arg0: i32, %arg1: i32) -> (i32, i32) {
    %c0_i32 = arith.constant 0 : i32
    %c0_i32_0 = arith.constant 0 : i32
    %c0_i32_1 = arith.constant 0 : i32
    return %c0_i32, %c0_i32_0 : i32, i32
  }
  func.func @transform_3(%arg0: i32, %arg1: i32) -> (i32, i32) {
    %c0_i32 = arith.constant 0 : i32
    %c0_i32_0 = arith.constant 0 : i32
    %c0_i32_1 = arith.constant 0 : i32
    return %c0_i32, %c0_i32_0 : i32, i32
  }
  func.func @transform_4(%arg0: i32, %arg1: i32) -> (i32, i32) {
    %c0_i32 = arith.constant 0 : i32
    %c0_i32_0 = arith.constant 0 : i32
    %c0_i32_1 = arith.constant 0 : i32
    return %c0_i32, %c0_i32_0 : i32, i32
  }
  func.func @transform_5(%arg0: i32, %arg1: i32) -> (i32, i32, i32) {
    %c0_i32 = arith.constant 0 : i32
    %c0_i32_0 = arith.constant 0 : i32
    return %arg0, %c0_i32, %arg1 : i32, i32, i32
  }
}

</mosaic_0001>

<bundles_post_ra>
// kernel: tpu_custom_call.1
= control target key start
LH: loop header
LB: loop body
LE: loop exit
PB: predicated region body
PF: predicated region fallthrough
CT: control target
= control target key end

     0   :  { %10 = vsyncpa [#allocation3], 0  ;;  %s875_s0 = inlined_call_operand.hbm [shape: f32[2,4,256], index: 0, kind: input, shape index: {}]   ;;  %s876_s1 = inlined_call_operand.vmem [shape: f32[2,4], index: 1, kind: input, shape index: {}]   ;;  %s877_s2 = inlined_call_operand.vmem [shape: f32[2,1], index: 2, kind: input, shape index: {}]   ;;  %s878_s3 = inlined_call_operand.vmem [shape: f32[4,2], index: 3, kind: input, shape index: {}]   ;;  %s879_s4 = inlined_call_operand.vmem [shape: f32[4,1], index: 4, kind: input, shape index: {}]   ;;  %s880_s5 = inlined_call_operand.hbm [shape: f32[2,4,256], index: 5, kind: output, shape index: {}]  }
   0x1   :  { %12 = vsyncpa [#allocation3 + $0x1], 0 }
   0x2   :  { %13 = vsyncpa [#allocation4], 0 }
   0x3   :  { %15 = vsyncpa [#allocation4 + $0x1], 0  ;;  %s736_s18 = smov 0   ;;  %s738_s19 = smov 0  }
   0x4   :  { %s740_s20 = smov 0   ;;  %s742_s21 = smov 0  }
   0x5   :  { %s744_s22 = smov 0   ;;  %s746_s23 = smov 0  }
   0x6 LB: > { %s502_s24 = sadd.s32 4294967295, %s703_s23   ;;  %s503_s25 = sadd.s32 4294967294, %s703_s23   ;;  %s703_s23 = sphi %s746_s23, %s21_s23   ;;  %s699_s22 = sphi %s744_s22, %s889_s22   ;;  %s695_s21 = sphi %s742_s21, %s888_s21   ;;  %s691_s20 = sphi %s740_s20, %s887_s20   ;;  %s687_s19 = sphi %s738_s19, %s886_s19   ;;  %s683_s18 = sphi %s736_s18, %s885_s18  }
   0x7   : > { %s33_s26 = sadd.s32 1, %s699_s22  ;;  %s42_s27 = sadd.s32 1, %s691_s20 }
   0x8   : > { %p35_p0 = scmp.ge.s32.totalorder %s33_s26, 2  ;;  %p49_p1 = scmp.ne.s32.totalorder %s691_s20, %s687_s19 }
   0x9   : > { %p50_p2 = scmp.eq.s32.totalorder %s703_s23, 0  ;;  %p55_p3 = scmp.ne.s32.totalorder %s687_s19, %s683_s18 }
   0xa   : > { %s891_s26 = smov (%p35_p0, %s33_s26), 0  ;;  %p56_p5 = scmp.eq.s32.totalorder %s502_s24, 0 }
   0xb   : > { %p777_p4 = por %p50_p2, %p49_p1  ;;  %s37_s29 = ssub.s32 %s699_s22, %s891_s26 }
   0xc   : > { %p165_p6 = scmp.eq.s32.totalorder %s502_s24, 1  ;;  %p40_p7 = scmp.eq.s32.totalorder %s37_s29, 0 }
   0xd   : > { %p783_p8 = por %p56_p5, %p55_p3  ;;  %p171_p10 = scmp.eq.s32.totalorder %s503_s25, 1 }
   0xe   : > { %p787_p9 = por %p165_p6, %p49_p1  ;;  %p505_p12 = scmp.ge.s32.totalorder %s703_s23, 2 }
   0xf   : > { %s792_s7 = scalar_select %p40_p7, %s691_s20, %s42_s27  }
  0x10   : > { %p794_p11 = por %p171_p10, %p55_p3  ;;  %p539_p13 = scmp.lt.s32.totalorder %s703_s23, 2 }
  0x11   : > { %s203_s9 = sand.u32 1, %s691_s20   ;;  %s525_s11 = sshll.u32 %s699_s22, 3 }
  0x12   : > { %s506_s10 = sshll.u32 %s203_s9, 3  ;;  %s214_s14 = scalar_lea.hbm %s875_s0, %s525_s11 }
  0x13   : > { %s207_s15 = scalar_lea.vmem [#allocation2], %s506_s10  ;;  %s216_s17 = sshll.u32 %s214_s14, 4  ;;  %s217_s17 = int_to_ptr.hbm [resolvable:$true] %s216_s17 }
  0x14   : > { %s218_s16 = sshll.u32 %s207_s15, 4  ;;  %p532_p0 = pnand %p539_p13, %p777_p4  ;;  %s219_s16 = int_to_ptr.vmem [resolvable:$true] %s218_s16 }
  0x15   : > { %p509_p1 = scmp.ge.s32.totalorder %s703_s23, 1  ;;  %p223_p2 = scmp.lt.s32.totalorder %s703_s23, 3 }
  0x16   : > { %s204_s24 = scalar_lea.sflag [#allocation3], %s203_s9 }
  0x17   : > { %534 = dma.hbm_to_vmem [thread:$0]  (!%p532_p0), %s217_s17, 128, %s219_s16, %s204_s24  }
  0x18   : > { %p224_p3 = pnand %p509_p1, %p223_p2 }
  0x19   : > { %s810_s25 = sand.u32 (!%p224_p3), 1, %s687_s19  }
  0x1a   : > { %227 = sbr.rel (%p224_p3) target bundleno = 317 (0x13d), region = 40  ;;  %s510_s27 = sshll.u32 (!%p224_p3), %s810_s25, 3 }
  0x1b   : > { %s230_s29 = scalar_lea.sflag (!%p224_p3), [#allocation3], %s810_s25  ;;  %s233_s10 = scalar_lea.vmem (!%p224_p3), [#allocation2], %s510_s27 }
  0x1f   : > { %674 = dma.done.wait (%p783_p8), %s230_s29, 128  }
  0x20   : > { %676 = vsyncadd (%p783_p8), %s230_s29, 4294967168  ;;  %v705_v0 = vmov 0   ;;  %v263_v1 = vld [vmem:[%s233_s10] sm:$0xff]  ;;  %v265_v2 = vld [vmem:[%s877_s2] sm:$0x3]  ;;  %vm279_vm0 = vcmask 1043456  }
  0x21   : > { %590 = vset.pattern.permute.xlu0 %v705_v0  ;;  %272 = vst [vmem:[#allocation1] ss:$2 sm:$0xff] %v263_v1  ;;  %v264_v3 = vld [vmem:[%s876_s1] sm:$0x3]  ;;  %vm275_vm1 = vcmask 31744   ;;  %vm337_vm2 = vcmask 1041408  }
  0x22   : > { %268 = vperm.xlu0 %590, %v265_v2   ;;  %v327_v4 = vld [vmem:[%s879_s4] sm:$0xf]  ;;  %vm333_vm3 = vcmask 15360   ;;  %s526_s16 = sshll.u32 %s695_s21, 3  ;;  %s260_s10 = scalar_lea.vmem [#allocation5], %s510_s27 }
  0x23   : > { %v326_v14 = vld [vmem:[%s878_s3] sm:$0xf]  ;;  %s413_s29 = scalar_lea.hbm %s880_s5, %s526_s16  ;;  %s415_s28 = sshll.u32 %s260_s10, 4  ;;  %s416_s28 = int_to_ptr.vmem [resolvable:$true] %s415_s28 }
  0x24   : > { %s417_s9 = sshll.u32 %s413_s29, 4  ;;  %s400_s21 = scalar_lea.sflag [#allocation4], %s810_s25  ;;  %s418_s9 = int_to_ptr.hbm [resolvable:$true] %s417_s9 }
  0x25   : > { %s635_s11 = sshra.s32 %s418_s9, 4  ;;  %s641_s27 = scalar_lea.hbm %s880_s5, 16  ;;  %s636_s11 = int_to_ptr.hbm [resolvable:$true] %s635_s11 }
  0x26   : > { %s637_s12 = scalar_lea.hbm %s636_s11, 8  ;;  %p642_p7 = scmp.lt.s32.totalorder %s636_s11, %s880_s5 }
  0x27   : > { %p638_p4 = scmp.ne.s32.totalorder %s636_s11, %s637_s12  ;;  %p643_p8 = scmp.lt.s32.totalorder %s641_s27, %s637_s12 }
  0x28   : > { %v273_v5 = vld.sshfl [vmem:[#allocation1] sm:$0xff pattern:$0x75316420]  ;;  %v274_v6 = vld.sshfl [vmem:[#allocation1 + $0x8] sm:$0xff pattern:$0x75316420] }
  0x29   : > { %512 = vmatpush.msk.msra.mxu0 %vm279_vm0, %v273_v5  ;;  %514 = vmatpush.msk.msra.mxu1 %vm279_vm0, %v274_v6  ;;  %384 = vst [vmem:[#allocation1] ss:$2 sm:$0xff] %v263_v1  ;;  %p639_p5 = pnand %p638_p4, %p787_p9  ;;  %p644_p10 = por %p643_p8, %p642_p7 }
  0x2a   : > { %513 = vmatmul.msk.f32.vlgmr.msra.gmra.mxu0 %vm275_vm1, %v264_v3  ;;  %515 = vmatmul.msk.f32.vlgmr.msra.gmra.mxu1 %vm275_vm1, %v264_v3 }
  0x2b   : > { %330 = vperm.xlu0 %590, %v327_v4   ;;  %p640_p6 = pneg %p639_p5 }
  0x2d   : > { %p645_p13 = pnand %p644_p10, %p640_p6 }
  0x30   : > { %v385_v17 = vld.sshfl [vmem:[#allocation1] sm:$0xff pattern:$0x75316420]  ;;  %v386_v19 = vld.sshfl [vmem:[#allocation1 + $0x8] sm:$0xff pattern:$0x75316420] }
  0x94   : > { %v269_v7 = vpop.permute.xlu0 %268 }
  0x9d   : > { %v331_v15 = vpop.permute.xlu0 %330 }
  0xa7   : > { %v301_v8 = vpop.f32.mrf.mxu0  ;;  %v321_v9 = vpop.f32.mrf.mxu1 }
  0xa8   : > { %v302_v10 = vadd.f32 %v301_v8, %v269_v7  ;;  %v322_v11 = vadd.f32 %v321_v9, %v269_v7 }
  0xaa   : > { %v324_v12 = vmax.f32 %v302_v10, 0.0  ;;  %v325_v13 = vmax.f32 %v322_v11, 0.0 }
  0xac   : > { %516 = vmatpush.msk.msra.mxu2 %vm337_vm2, %v324_v12  ;;  %518 = vmatpush.msk.msra.mxu3 %vm337_vm2, %v325_v13 }
  0xad   : > { %517 = vmatmul.msk.f32.vlgmr.msra.gmra.mxu2 %vm333_vm3, %v326_v14  ;;  %519 = vmatmul.msk.f32.vlgmr.msra.gmra.mxu3 %vm333_vm3, %v326_v14 }
 0x130   : > { %v361_v16 = vpop.f32.mrf.mxu2  ;;  %v381_v18 = vpop.f32.mrf.mxu3 }
 0x131   : > { %v362_v20 = vadd.f32 %v361_v16, %v331_v15  ;;  %v382_v21 = vadd.f32 %v381_v18, %v331_v15 }
 0x133   : > { %v389_v22 = vadd.f32 %v385_v17, %v362_v20  ;;  %v390_v23 = vadd.f32 %v386_v19, %v382_v21 }
 0x135   : > { %v392_v24 = vmax.f32 %v390_v23, 0.0  ;;  %v391_v25 = vmax.f32 %v389_v22, 0.0 }
 0x137   : > { %v395_v26 = vrot.slane %v392_v24, 4 }
 0x139   : > { %v396_v27 = vsel %vm279_vm0, %v391_v25, %v395_v26 }
 0x13a   : > { %398 = vst [vmem:[%s260_s10] sm:$0xff] %v396_v27 }
 0x13b   : > { %648 = shalt.err (!%p645_p13)
}
 0x13c   : > { %529 = dma.vmem_to_hbm [thread:$0]  (%p787_p9), %s416_s28, 128, %s418_s9, %s400_s21  }
 0x13d PF: > { %s429_s25 = sand.u32 1, %s683_s18   ;;  %p536_p0 = pnand %p505_p12, %p794_p11 }
 0x13e   : > { %s430_s16 = scalar_lea.sflag [#allocation4], %s429_s25 }
 0x13f   : > { %p537_p1 = pneg %p536_p0 }
 0x141   : > { %678 = dma.done.wait (%p537_p1), %s430_s16, 128  }
 0x142   : > { %680 = vsyncadd (%p537_p1), %s430_s16, 4294967168  ;;  %s21_s23 = sadd.s32 1, %s703_s23   ;;  %s885_s18 = smov %s687_s19 }
 0x143   : > { %p18_p2 = scmp.ge.s32.totalorder %s21_s23, 4   ;;  %s886_s19 = smov %s691_s20 }
 0x144   : > { %s887_s20 = smov %s792_s7  ;;  %s888_s21 = smov %s699_s22 }
 0x145   : > { %s889_s22 = smov %s891_s26  ;;  %20 = sbr.rel (!%p18_p2) target bundleno = 6 (0x6), region = 85 }
 0x14a   :  { %436 = vsyncpa [#allocation3], 1 }
 0x14b   :  { %438 = vsyncpa [#allocation3 + $0x1], 1 }
 0x14c   :  { %439 = vsyncpa [#allocation4], 1 }
 0x14d   :  { %441 = vsyncpa [#allocation4 + $0x1], 1 }

</bundles_post_ra>
